<compile_context>
chip_gen: v5e
topology: v5e:2x2
jax: 0.10.0
libtpu: 0.0.40
codegen_flags: <defaults>
</compile_context>

<pallas_src>
import jax
import jax.numpy as jnp
from jax.experimental import pallas as pl
from jax.experimental.pallas import tpu as pltpu


def _round_up(x, m):
    return (x + m - 1) // m * m


# ---------------------------------------------------------------------------
# Fused kernel factory: MLP (all layers) + single-pass segmented pooling
# ---------------------------------------------------------------------------
def _make_fused_kernel(n_hidden, batch_size, eps=1e-5):
    n_param_refs = 4 * n_hidden + 2   # (W,b,gamma,beta) per hidden layer + (W,b) final

    def kernel(bidx_ref, x_ref, *refs):
        param_refs = refs[:n_param_refs]
        out_ref = refs[n_param_refs]
        sum_acc, max_acc, min_acc, cnt_acc = refs[n_param_refs + 1:]

        step = pl.program_id(0)

        # ---- init running accumulators on the first tile --------------------
        @pl.when(step == 0)
        def _init():
            sum_acc[...] = jnp.zeros_like(sum_acc)
            cnt_acc[...] = jnp.zeros_like(cnt_acc)
            max_acc[...] = jnp.full_like(max_acc, -jnp.inf)
            min_acc[...] = jnp.full_like(min_acc, jnp.inf)

        # ---- fused MLP on this row tile (activations stay in VMEM/vregs) ----
        x = x_ref[...].astype(jnp.float32)                  # (TILE_N, Din)
        p = 0
        for _ in range(n_hidden):
            w = param_refs[p][...]
            b = param_refs[p + 1][...]
            g = param_refs[p + 2][...]
            bt = param_refs[p + 3][...]
            p += 4
            y = jnp.dot(x, w, preferred_element_type=jnp.float32) + b
            mu = jnp.mean(y, axis=-1, keepdims=True)
            var = jnp.mean(jnp.square(y - mu), axis=-1, keepdims=True)  # biased, like torch LN
            y = (y - mu) * jax.lax.rsqrt(var + eps) * g + bt
            x = jnp.maximum(y, 0.0)
        w = param_refs[p][...]
        b = param_refs[p + 1][...]
        x = jnp.dot(x, w, preferred_element_type=jnp.float32) + b       # (TILE_N, F)

        # ---- single-pass segmented mean/max/min pooling ----------------------
        bidx = bidx_ref[...]                                 # (TILE_N, 1) int32; -1 marks pad rows
        # TODO(synk): for large batch_size, replace this static unroll with a
        # one-hot (TILE_N, B) x (TILE_N, F) dot_general on the MXU.
        for bid in range(batch_size):
            m = bidx == bid                                  # (TILE_N, 1) bool
            cnt_acc[bid:bid + 1, :] = cnt_acc[bid:bid + 1, :] + jnp.sum(
                m.astype(jnp.float32), axis=0, keepdims=True)
            sum_acc[bid:bid + 1, :] = sum_acc[bid:bid + 1, :] + jnp.sum(
                jnp.where(m, x, 0.0), axis=0, keepdims=True)
            max_acc[bid:bid + 1, :] = jnp.maximum(
                max_acc[bid:bid + 1, :],
                jnp.max(jnp.where(m, x, -jnp.inf), axis=0, keepdims=True))
            min_acc[bid:bid + 1, :] = jnp.minimum(
                min_acc[bid:bid + 1, :],
                jnp.min(jnp.where(m, x, jnp.inf), axis=0, keepdims=True))

        # ---- finalize on the last tile ---------------------------------------
        @pl.when(step == pl.num_programs(0) - 1)
        def _fin():
            cnt = jnp.maximum(cnt_acc[...], 1.0)             # guard empty batches (avoid NaN)
            out_ref[0, :, :] = sum_acc[...] / cnt            # mean
            out_ref[1, :, :] = max_acc[...]                  # max
            out_ref[2, :, :] = min_acc[...]                  # min

    return kernel


# ---------------------------------------------------------------------------
# Wrapper
# ---------------------------------------------------------------------------
def bc_encoder_forward(positions, batch_index, params, batch_size,
                       *, tile_n=1024, stream_bf16=True):
    """positions: (N, Din) float; batch_index: (N,) or (N,1) int; params from init_params."""
    N, d_in = positions.shape
    n_hidden = len(params) - 1
    feat = params[-1][0].shape[1]

    # Row tile: multiple of 8 sublanes; pad N up to a multiple of the tile so the
    # grid divides evenly (padded rows carry batch_index = -1 -> excluded from pools).
    tile = min(tile_n, _round_up(N, 8))
    n_pad = _round_up(N, tile)
    n_tiles = n_pad // tile

    x = positions.astype(jnp.bfloat16 if stream_bf16 else jnp.float32)
    if n_pad != N:
        x = jnp.pad(x, ((0, n_pad - N), (0, 0)))
    bidx = batch_index.reshape(-1).astype(jnp.int32)
    bidx = jnp.pad(bidx, (0, n_pad - N), constant_values=-1).reshape(n_pad, 1)

    flat_params = []
    in_specs = [
        pl.BlockSpec((tile, 1), lambda i: (i, 0)),       # batch index tile
        pl.BlockSpec((tile, d_in), lambda i: (i, 0)),    # positions tile (bf16 stream)
    ]

    def _add_param(a):                                   # VMEM-resident, loaded once
        a = a.astype(jnp.float32)
        flat_params.append(a)
        in_specs.append(pl.BlockSpec(a.shape, lambda i: (0, 0)))

    for li, (w, b, g, bt) in enumerate(params):
        _add_param(w)
        _add_param(b.reshape(1, -1))
        if li < n_hidden:
            _add_param(g.reshape(1, -1))
            _add_param(bt.reshape(1, -1))

    kernel = _make_fused_kernel(n_hidden, batch_size)

    out = pl.pallas_call(
        kernel,
        out_shape=jax.ShapeDtypeStruct((3, batch_size, feat), jnp.float32),
        grid=(n_tiles,),
        in_specs=in_specs,
        out_specs=pl.BlockSpec((3, batch_size, feat), lambda i: (0, 0, 0)),
        scratch_shapes=[
            pltpu.VMEM((batch_size, feat), jnp.float32),   # running sum
            pltpu.VMEM((batch_size, feat), jnp.float32),   # running max
            pltpu.VMEM((batch_size, feat), jnp.float32),   # running min
            pltpu.VMEM((batch_size, 1), jnp.float32),      # running count
        ],
        # N axis carries cross-step accumulators -> must be "arbitrary"
        compiler_params=pltpu.CompilerParams(dimension_semantics=("arbitrary",)),
    )(bidx, x, *flat_params)

    # (3, B, F) -> (B, [mean | max | min]) to match torch.cat((mean, max, min))
    return jnp.transpose(out, (1, 0, 2)).reshape(batch_size, 3 * feat)


# ---------------------------------------------------------------------------
# Parameters (shapes match nn.Linear / nn.LayerNorm)
# ---------------------------------------------------------------------------
def init_params(key, mlp_layers):
    params = []
    n_layers = len(mlp_layers) - 1
    keys = jax.random.split(key, 2 * n_layers)
    for i in range(n_layers):
        din, dout = mlp_layers[i], mlp_layers[i + 1]
        W = jax.random.normal(keys[2 * i], (din, dout), jnp.float32) * (1.0 / jnp.sqrt(din))
        b = jax.random.normal(keys[2 * i + 1], (dout,), jnp.float32) * 0.01
        if i < n_layers - 1:
            gamma = jnp.ones((dout,), jnp.float32)
            beta = jnp.zeros((dout,), jnp.float32)
        else:
            gamma, beta = None, None
        params.append((W, b, gamma, beta))
    return params


# ---------------------------------------------------------------------------
# Pure-JAX reference (correctness check only)
# ---------------------------------------------------------------------------
def bc_encoder_reference(positions, batch_index, params, batch_size):
    x = positions.astype(jnp.float32)
    n_layers = len(params)
    for i, (W, b, gamma, beta) in enumerate(params):
        x = jnp.dot(x, W, precision=jax.lax.Precision.HIGHEST) + b
        if i < n_layers - 1:
            mu = jnp.mean(x, axis=-1, keepdims=True)
            var = jnp.mean((x - mu) ** 2, axis=-1, keepdims=True)
            x = (x - mu) / jnp.sqrt(var + 1e-5) * gamma + beta
            x = jnp.maximum(x, 0.0)
    pooled = []
    for idx in range(batch_size):
        m = batch_index.reshape(-1) == idx
        bx = x[m]
        pooled.append(jnp.concatenate([bx.mean(0), bx.max(0), bx.min(0)]))
    return jnp.stack(pooled)


# ---------------------------------------------------------------------------
if __name__ == "__main__":
    key = jax.random.PRNGKey(0)
    k_pos, k_idx, k_par = jax.random.split(key, 3)

    N = 64                      # number of points
    mlp_layers = [8, 32, 32]    # in_dim -> hidden -> out_dim

    positions = jax.random.normal(k_pos, (N, mlp_layers[0]), jnp.float32)
    # deterministic assignment guaranteeing both batches are populated
    perm = jax.random.permutation(k_idx, N)
    batch_index = (perm >= N // 2).astype(jnp.int32)
    # mirrors `int(batch_index.max().item() + 1)` in the torch module
    B = int(jax.device_get(batch_index.max())) + 1

    params = init_params(k_par, mlp_layers)

    # Run once with the default tile (single tile here) and once with a small
    # tile to exercise the multi-tile accumulate path.
    out = bc_encoder_forward(positions, batch_index, params, B)
    out = jax.block_until_ready(out)
    out_tiled = bc_encoder_forward(positions, batch_index, params, B, tile_n=16)
    out_tiled = jax.block_until_ready(out_tiled)

    # Reference uses the same bf16-quantized positions the kernel streams.
    pos_q = positions.astype(jnp.bfloat16).astype(jnp.float32)
    ref = bc_encoder_reference(pos_q, batch_index, params, B)

    assert out.shape == (B, 3 * mlp_layers[-1]), out.shape
    assert jnp.allclose(out, ref, atol=1e-2, rtol=1e-2), float(jnp.max(jnp.abs(out - ref)))
    assert jnp.allclose(out_tiled, ref, atol=1e-2, rtol=1e-2), float(jnp.max(jnp.abs(out_tiled - ref)))

    print("KERNEL_OK")
</pallas_src>

<mosaic_0001>
module attributes {stable_mosaic.version = 11 : i64} {
  func.func @kernel(%arg0: i32, %arg1: memref<64x1xi32, #tpu.memory_space<vmem>>, %arg2: memref<64x8xbf16, #tpu.memory_space<vmem>>, %arg3: memref<8x32xf32, #tpu.memory_space<vmem>>, %arg4: memref<1x32xf32, #tpu.memory_space<vmem>>, %arg5: memref<1x32xf32, #tpu.memory_space<vmem>>, %arg6: memref<1x32xf32, #tpu.memory_space<vmem>>, %arg7: memref<32x32xf32, #tpu.memory_space<vmem>>, %arg8: memref<1x32xf32, #tpu.memory_space<vmem>>, %arg9: memref<3x2x32xf32, #tpu.memory_space<vmem>>, %arg10: memref<2x32xf32, #tpu.memory_space<vmem>>, %arg11: memref<2x32xf32, #tpu.memory_space<vmem>>, %arg12: memref<2x32xf32, #tpu.memory_space<vmem>>, %arg13: memref<2x1xf32, #tpu.memory_space<vmem>>) attributes {dimension_semantics = [#tpu.dimension_semantics<arbitrary>], iteration_bounds = array<i64: 1>, scalar_prefetch = 0 : i64, scratch_operands = 4 : i64, tpu.core_type = #tpu.core_type<tc>, window_params = [{transform_indices = @transform_0, window_bounds = array<i64: 64, 1>}, {transform_indices = @transform_1, window_bounds = array<i64: 64, 8>}, {pipeline_mode = #tpu.pipeline_mode<synchronous>, transform_indices = @transform_2, window_bounds = array<i64: 8, 32>}, {pipeline_mode = #tpu.pipeline_mode<synchronous>, transform_indices = @transform_3, window_bounds = array<i64: 1, 32>}, {pipeline_mode = #tpu.pipeline_mode<synchronous>, transform_indices = @transform_4, window_bounds = array<i64: 1, 32>}, {pipeline_mode = #tpu.pipeline_mode<synchronous>, transform_indices = @transform_5, window_bounds = array<i64: 1, 32>}, {pipeline_mode = #tpu.pipeline_mode<synchronous>, transform_indices = @transform_6, window_bounds = array<i64: 32, 32>}, {pipeline_mode = #tpu.pipeline_mode<synchronous>, transform_indices = @transform_7, window_bounds = array<i64: 1, 32>}, {pipeline_mode = #tpu.pipeline_mode<synchronous>, transform_indices = @transform_8, window_bounds = array<i64: 3, 2, 32>}]} {
    %c0_i32 = arith.constant 0 : i32
    %0 = arith.cmpi eq, %arg0, %c0_i32 : i32
    %1 = arith.extui %0 : i1 to i32
    %c0_i32_0 = arith.constant 0 : i32
    %2 = arith.cmpi ne, %1, %c0_i32_0 : i32
    scf.if %2 {
      %cst_71 = arith.constant 0.000000e+00 : f32
      %117 = vector.broadcast %cst_71 : f32 to vector<2x32xf32>
      %c0_72 = arith.constant 0 : index
      %c0_73 = arith.constant 0 : index
      %118 = vector.load %arg10[%c0_72, %c0_73] : memref<2x32xf32, #tpu.memory_space<vmem>>, vector<2x32xf32>
      tpu.vector_store %arg10[%c0_72, %c0_73], %117 {strides = array<i32>} : memref<2x32xf32, #tpu.memory_space<vmem>>, vector<2x32xf32>,
      %cst_74 = arith.constant 0.000000e+00 : f32
      %119 = vector.broadcast %cst_74 : f32 to vector<2x1xf32>
      %c0_75 = arith.constant 0 : index
      %c0_76 = arith.constant 0 : index
      %120 = vector.load %arg13[%c0_75, %c0_76] : memref<2x1xf32, #tpu.memory_space<vmem>>, vector<2x1xf32>
      tpu.vector_store %arg13[%c0_75, %c0_76], %119 {strides = array<i32>} : memref<2x1xf32, #tpu.memory_space<vmem>>, vector<2x1xf32>,
      %cst_77 = arith.constant 0xFF800000 : f32
      %121 = vector.broadcast %cst_77 : f32 to vector<2x32xf32>
      %c0_78 = arith.constant 0 : index
      %c0_79 = arith.constant 0 : index
      %122 = vector.load %arg11[%c0_78, %c0_79] : memref<2x32xf32, #tpu.memory_space<vmem>>, vector<2x32xf32>
      tpu.vector_store %arg11[%c0_78, %c0_79], %121 {strides = array<i32>} : memref<2x32xf32, #tpu.memory_space<vmem>>, vector<2x32xf32>,
      %cst_80 = arith.constant 0x7F800000 : f32
      %123 = vector.broadcast %cst_80 : f32 to vector<2x32xf32>
      %c0_81 = arith.constant 0 : index
      %c0_82 = arith.constant 0 : index
      %124 = vector.load %arg12[%c0_81, %c0_82] : memref<2x32xf32, #tpu.memory_space<vmem>>, vector<2x32xf32>
      tpu.vector_store %arg12[%c0_81, %c0_82], %123 {strides = array<i32>} : memref<2x32xf32, #tpu.memory_space<vmem>>, vector<2x32xf32>,
    } else {
    }
    %c0 = arith.constant 0 : index
    %c0_1 = arith.constant 0 : index
    %3 = vector.load %arg2[%c0, %c0_1] : memref<64x8xbf16, #tpu.memory_space<vmem>>, vector<64x8xbf16>
    %4 = arith.extf %3 : vector<64x8xbf16> to vector<64x8xf32>
    %c0_2 = arith.constant 0 : index
    %c0_3 = arith.constant 0 : index
    %5 = vector.load %arg3[%c0_2, %c0_3] : memref<8x32xf32, #tpu.memory_space<vmem>>, vector<8x32xf32>
    %c0_4 = arith.constant 0 : index
    %c0_5 = arith.constant 0 : index
    %6 = vector.load %arg4[%c0_4, %c0_5] : memref<1x32xf32, #tpu.memory_space<vmem>>, vector<1x32xf32>
    %c0_6 = arith.constant 0 : index
    %c0_7 = arith.constant 0 : index
    %7 = vector.load %arg5[%c0_6, %c0_7] : memref<1x32xf32, #tpu.memory_space<vmem>>, vector<1x32xf32>
    %c0_8 = arith.constant 0 : index
    %c0_9 = arith.constant 0 : index
    %8 = vector.load %arg6[%c0_8, %c0_9] : memref<1x32xf32, #tpu.memory_space<vmem>>, vector<1x32xf32>
    %cst = arith.constant dense<0.000000e+00> : vector<64x32xf32>
    %9 = tpu.matmul %4, %5, %cst {dimension_numbers = #tpu.dot_dimension_numbers<[1], [0], [0], [1], [0, 0, 1, 1], [], []>} : vector<64x8xf32>, vector<8x32xf32>, vector<64x32xf32> -> vector<64x32xf32>
    %10 = vector.broadcast %6 : vector<1x32xf32> to vector<64x32xf32>
    %11 = arith.addf %9, %10 : vector<64x32xf32>
    %cst_10 = arith.constant dense<0.000000e+00> : vector<64xf32>
    %12 = vector.multi_reduction <add>, %11, %cst_10 [1] : vector<64x32xf32> to vector<64xf32>
    %13 = vector.shape_cast %12 : vector<64xf32> to vector<64x1xf32>
    %cst_11 = arith.constant 3.200000e+01 : f32
    %14 = vector.broadcast %cst_11 : f32 to vector<64x1xf32>
    %15 = arith.divf %13, %14 : vector<64x1xf32>
    %16 = vector.broadcast %15 : vector<64x1xf32> to vector<64x32xf32>
    %17 = arith.subf %11, %16 : vector<64x32xf32>
    %18 = arith.mulf %17, %17 : vector<64x32xf32>
    %cst_12 = arith.constant dense<0.000000e+00> : vector<64xf32>
    %19 = vector.multi_reduction <add>, %18, %cst_12 [1] : vector<64x32xf32> to vector<64xf32>
    %20 = vector.shape_cast %19 : vector<64xf32> to vector<64x1xf32>
    %cst_13 = arith.constant 3.200000e+01 : f32
    %21 = vector.broadcast %cst_13 : f32 to vector<64x1xf32>
    %22 = arith.divf %20, %21 : vector<64x1xf32>
    %23 = vector.broadcast %15 : vector<64x1xf32> to vector<64x32xf32>
    %24 = arith.subf %11, %23 : vector<64x32xf32>
    %cst_14 = arith.constant 9.99999974E-6 : f32
    %25 = vector.broadcast %cst_14 : f32 to vector<64x1xf32>
    %26 = arith.addf %22, %25 : vector<64x1xf32>
    %27 = math.rsqrt %26 : vector<64x1xf32>
    %28 = vector.broadcast %27 : vector<64x1xf32> to vector<64x32xf32>
    %29 = arith.mulf %24, %28 : vector<64x32xf32>
    %30 = vector.broadcast %7 : vector<1x32xf32> to vector<64x32xf32>
    %31 = arith.mulf %29, %30 : vector<64x32xf32>
    %32 = vector.broadcast %8 : vector<1x32xf32> to vector<64x32xf32>
    %33 = arith.addf %31, %32 : vector<64x32xf32>
    %cst_15 = arith.constant 0.000000e+00 : f32
    %34 = vector.broadcast %cst_15 : f32 to vector<64x32xf32>
    %35 = arith.maximumf %33, %34 : vector<64x32xf32>
    %c0_16 = arith.constant 0 : index
    %c0_17 = arith.constant 0 : index
    %36 = vector.load %arg7[%c0_16, %c0_17] : memref<32x32xf32, #tpu.memory_space<vmem>>, vector<32x32xf32>
    %c0_18 = arith.constant 0 : index
    %c0_19 = arith.constant 0 : index
    %37 = vector.load %arg8[%c0_18, %c0_19] : memref<1x32xf32, #tpu.memory_space<vmem>>, vector<1x32xf32>
    %cst_20 = arith.constant dense<0.000000e+00> : vector<64x32xf32>
    %38 = tpu.matmul %35, %36, %cst_20 {dimension_numbers = #tpu.dot_dimension_numbers<[1], [0], [0], [1], [0, 0, 1, 1], [], []>} : vector<64x32xf32>, vector<32x32xf32>, vector<64x32xf32> -> vector<64x32xf32>
    %39 = vector.broadcast %37 : vector<1x32xf32> to vector<64x32xf32>
    %40 = arith.addf %38, %39 : vector<64x32xf32>
    %c0_21 = arith.constant 0 : index
    %c0_22 = arith.constant 0 : index
    %41 = vector.load %arg1[%c0_21, %c0_22] : memref<64x1xi32, #tpu.memory_space<vmem>>, vector<64x1xi32>
    %c0_i32_23 = arith.constant 0 : i32
    %42 = vector.broadcast %c0_i32_23 : i32 to vector<64x1xi32>
    %43 = arith.cmpi eq, %41, %42 : vector<64x1xi32>
    %c0_24 = arith.constant 0 : index
    %c0_25 = arith.constant 0 : index
    %44 = vector.load %arg13[%c0_24, %c0_25] : memref<2x1xf32, #tpu.memory_space<vmem>>, vector<1x1xf32>
    %45 = arith.extui %43 : vector<64x1xi1> to vector<64x1xi32>
    %46 = arith.sitofp %45 : vector<64x1xi32> to vector<64x1xf32>
    %cst_26 = arith.constant dense<0.000000e+00> : vector<1xf32>
    %47 = vector.multi_reduction <add>, %46, %cst_26 [0] : vector<64x1xf32> to vector<1xf32>
    %48 = vector.shape_cast %47 : vector<1xf32> to vector<1x1xf32>
    %49 = arith.addf %44, %48 : vector<1x1xf32>
    %c0_27 = arith.constant 0 : index
    %c0_28 = arith.constant 0 : index
    %50 = vector.load %arg13[%c0_27, %c0_28] : memref<2x1xf32, #tpu.memory_space<vmem>>, vector<1x1xf32>
    tpu.vector_store %arg13[%c0_27, %c0_28], %49 {strides = array<i32>} : memref<2x1xf32, #tpu.memory_space<vmem>>, vector<1x1xf32>,
    %c0_29 = arith.constant 0 : index
    %c0_30 = arith.constant 0 : index
    %51 = vector.load %arg10[%c0_29, %c0_30] : memref<2x32xf32, #tpu.memory_space<vmem>>, vector<1x32xf32>
    %cst_31 = arith.constant 0.000000e+00 : f32
    %52 = vector.shape_cast %43 : vector<64x1xi1> to vector<64x1xi1>
    %53 = vector.broadcast %52 : vector<64x1xi1> to vector<64x32xi1>
    %54 = vector.broadcast %cst_31 : f32 to vector<64x32xf32>
    %55 = arith.select %53, %40, %54 : vector<64x32xi1>, vector<64x32xf32>
    %cst_32 = arith.constant dense<0.000000e+00> : vector<32xf32>
    %56 = vector.multi_reduction <add>, %55, %cst_32 [0] : vector<64x32xf32> to vector<32xf32>
    %57 = vector.shape_cast %56 : vector<32xf32> to vector<1x32xf32>
    %58 = arith.addf %51, %57 : vector<1x32xf32>
    %c0_33 = arith.constant 0 : index
    %c0_34 = arith.constant 0 : index
    %59 = vector.load %arg10[%c0_33, %c0_34] : memref<2x32xf32, #tpu.memory_space<vmem>>, vector<1x32xf32>
    tpu.vector_store %arg10[%c0_33, %c0_34], %58 {strides = array<i32>} : memref<2x32xf32, #tpu.memory_space<vmem>>, vector<1x32xf32>,
    %c0_35 = arith.constant 0 : index
    %c0_36 = arith.constant 0 : index
    %60 = vector.load %arg11[%c0_35, %c0_36] : memref<2x32xf32, #tpu.memory_space<vmem>>, vector<1x32xf32>
    %cst_37 = arith.constant 0xFF800000 : f32
    %61 = vector.shape_cast %43 : vector<64x1xi1> to vector<64x1xi1>
    %62 = vector.broadcast %61 : vector<64x1xi1> to vector<64x32xi1>
    %63 = vector.broadcast %cst_37 : f32 to vector<64x32xf32>
    %64 = arith.select %62, %40, %63 : vector<64x32xi1>, vector<64x32xf32>
    %cst_38 = arith.constant dense<0xFF800000> : vector<32xf32>
    %65 = vector.multi_reduction <maximumf>, %64, %cst_38 [0] : vector<64x32xf32> to vector<32xf32>
    %66 = vector.shape_cast %65 : vector<32xf32> to vector<1x32xf32>
    %67 = arith.maximumf %60, %66 : vector<1x32xf32>
    %c0_39 = arith.constant 0 : index
    %c0_40 = arith.constant 0 : index
    %68 = vector.load %arg11[%c0_39, %c0_40] : memref<2x32xf32, #tpu.memory_space<vmem>>, vector<1x32xf32>
    tpu.vector_store %arg11[%c0_39, %c0_40], %67 {strides = array<i32>} : memref<2x32xf32, #tpu.memory_space<vmem>>, vector<1x32xf32>,
    %c0_41 = arith.constant 0 : index
    %c0_42 = arith.constant 0 : index
    %69 = vector.load %arg12[%c0_41, %c0_42] : memref<2x32xf32, #tpu.memory_space<vmem>>, vector<1x32xf32>
    %cst_43 = arith.constant 0x7F800000 : f32
    %70 = vector.shape_cast %43 : vector<64x1xi1> to vector<64x1xi1>
    %71 = vector.broadcast %70 : vector<64x1xi1> to vector<64x32xi1>
    %72 = vector.broadcast %cst_43 : f32 to vector<64x32xf32>
    %73 = arith.select %71, %40, %72 : vector<64x32xi1>, vector<64x32xf32>
    %cst_44 = arith.constant dense<0x7F800000> : vector<32xf32>
    %74 = vector.multi_reduction <minimumf>, %73, %cst_44 [0] : vector<64x32xf32> to vector<32xf32>
    %75 = vector.shape_cast %74 : vector<32xf32> to vector<1x32xf32>
    %76 = arith.minimumf %69, %75 : vector<1x32xf32>
    %c0_45 = arith.constant 0 : index
    %c0_46 = arith.constant 0 : index
    %77 = vector.load %arg12[%c0_45, %c0_46] : memref<2x32xf32, #tpu.memory_space<vmem>>, vector<1x32xf32>
    tpu.vector_store %arg12[%c0_45, %c0_46], %76 {strides = array<i32>} : memref<2x32xf32, #tpu.memory_space<vmem>>, vector<1x32xf32>,
    %c1_i32 = arith.constant 1 : i32
    %78 = vector.broadcast %c1_i32 : i32 to vector<64x1xi32>
    %79 = arith.cmpi eq, %41, %78 : vector<64x1xi32>
    %c1 = arith.constant 1 : index
    %c0_47 = arith.constant 0 : index
    %80 = vector.load %arg13[%c1, %c0_47] : memref<2x1xf32, #tpu.memory_space<vmem>>, vector<1x1xf32>
    %81 = arith.extui %79 : vector<64x1xi1> to vector<64x1xi32>
    %82 = arith.sitofp %81 : vector<64x1xi32> to vector<64x1xf32>
    %cst_48 = arith.constant dense<0.000000e+00> : vector<1xf32>
    %83 = vector.multi_reduction <add>, %82, %cst_48 [0] : vector<64x1xf32> to vector<1xf32>
    %84 = vector.shape_cast %83 : vector<1xf32> to vector<1x1xf32>
    %85 = arith.addf %80, %84 : vector<1x1xf32>
    %c1_49 = arith.constant 1 : index
    %c0_50 = arith.constant 0 : index
    %86 = vector.load %arg13[%c1_49, %c0_50] : memref<2x1xf32, #tpu.memory_space<vmem>>, vector<1x1xf32>
    tpu.vector_store %arg13[%c1_49, %c0_50], %85 {strides = array<i32>} : memref<2x1xf32, #tpu.memory_space<vmem>>, vector<1x1xf32>,
    %c1_51 = arith.constant 1 : index
    %c0_52 = arith.constant 0 : index
    %87 = vector.load %arg10[%c1_51, %c0_52] : memref<2x32xf32, #tpu.memory_space<vmem>>, vector<1x32xf32>
    %cst_53 = arith.constant 0.000000e+00 : f32
    %88 = vector.shape_cast %79 : vector<64x1xi1> to vector<64x1xi1>
    %89 = vector.broadcast %88 : vector<64x1xi1> to vector<64x32xi1>
    %90 = vector.broadcast %cst_53 : f32 to vector<64x32xf32>
    %91 = arith.select %89, %40, %90 : vector<64x32xi1>, vector<64x32xf32>
    %cst_54 = arith.constant dense<0.000000e+00> : vector<32xf32>
    %92 = vector.multi_reduction <add>, %91, %cst_54 [0] : vector<64x32xf32> to vector<32xf32>
    %93 = vector.shape_cast %92 : vector<32xf32> to vector<1x32xf32>
    %94 = arith.addf %87, %93 : vector<1x32xf32>
    %c1_55 = arith.constant 1 : index
    %c0_56 = arith.constant 0 : index
    %95 = vector.load %arg10[%c1_55, %c0_56] : memref<2x32xf32, #tpu.memory_space<vmem>>, vector<1x32xf32>
    tpu.vector_store %arg10[%c1_55, %c0_56], %94 {strides = array<i32>} : memref<2x32xf32, #tpu.memory_space<vmem>>, vector<1x32xf32>,
    %c1_57 = arith.constant 1 : index
    %c0_58 = arith.constant 0 : index
    %96 = vector.load %arg11[%c1_57, %c0_58] : memref<2x32xf32, #tpu.memory_space<vmem>>, vector<1x32xf32>
    %cst_59 = arith.constant 0xFF800000 : f32
    %97 = vector.shape_cast %79 : vector<64x1xi1> to vector<64x1xi1>
    %98 = vector.broadcast %97 : vector<64x1xi1> to vector<64x32xi1>
    %99 = vector.broadcast %cst_59 : f32 to vector<64x32xf32>
    %100 = arith.select %98, %40, %99 : vector<64x32xi1>, vector<64x32xf32>
    %cst_60 = arith.constant dense<0xFF800000> : vector<32xf32>
    %101 = vector.multi_reduction <maximumf>, %100, %cst_60 [0] : vector<64x32xf32> to vector<32xf32>
    %102 = vector.shape_cast %101 : vector<32xf32> to vector<1x32xf32>
    %103 = arith.maximumf %96, %102 : vector<1x32xf32>
    %c1_61 = arith.constant 1 : index
    %c0_62 = arith.constant 0 : index
    %104 = vector.load %arg11[%c1_61, %c0_62] : memref<2x32xf32, #tpu.memory_space<vmem>>, vector<1x32xf32>
    tpu.vector_store %arg11[%c1_61, %c0_62], %103 {strides = array<i32>} : memref<2x32xf32, #tpu.memory_space<vmem>>, vector<1x32xf32>,
    %c1_63 = arith.constant 1 : index
    %c0_64 = arith.constant 0 : index
    %105 = vector.load %arg12[%c1_63, %c0_64] : memref<2x32xf32, #tpu.memory_space<vmem>>, vector<1x32xf32>
    %cst_65 = arith.constant 0x7F800000 : f32
    %106 = vector.shape_cast %79 : vector<64x1xi1> to vector<64x1xi1>
    %107 = vector.broadcast %106 : vector<64x1xi1> to vector<64x32xi1>
    %108 = vector.broadcast %cst_65 : f32 to vector<64x32xf32>
    %109 = arith.select %107, %40, %108 : vector<64x32xi1>, vector<64x32xf32>
    %cst_66 = arith.constant dense<0x7F800000> : vector<32xf32>
    %110 = vector.multi_reduction <minimumf>, %109, %cst_66 [0] : vector<64x32xf32> to vector<32xf32>
    %111 = vector.shape_cast %110 : vector<32xf32> to vector<1x32xf32>
    %112 = arith.minimumf %105, %111 : vector<1x32xf32>
    %c1_67 = arith.constant 1 : index
    %c0_68 = arith.constant 0 : index
    %113 = vector.load %arg12[%c1_67, %c0_68] : memref<2x32xf32, #tpu.memory_space<vmem>>, vector<1x32xf32>
    tpu.vector_store %arg12[%c1_67, %c0_68], %112 {strides = array<i32>} : memref<2x32xf32, #tpu.memory_space<vmem>>, vector<1x32xf32>,
    %c0_i32_69 = arith.constant 0 : i32
    %114 = arith.cmpi eq, %arg0, %c0_i32_69 : i32
    %115 = arith.extui %114 : i1 to i32
    %c0_i32_70 = arith.constant 0 : i32
    %116 = arith.cmpi ne, %115, %c0_i32_70 : i32
    scf.if %116 {
      %c0_71 = arith.constant 0 : index
      %c0_72 = arith.constant 0 : index
      %117 = vector.load %arg13[%c0_71, %c0_72] : memref<2x1xf32, #tpu.memory_space<vmem>>, vector<2x1xf32>
      %cst_73 = arith.constant 1.000000e+00 : f32
      %118 = vector.broadcast %cst_73 : f32 to vector<2x1xf32>
      %119 = arith.maximumf %117, %118 : vector<2x1xf32>
      %c0_74 = arith.constant 0 : index
      %c0_75 = arith.constant 0 : index
      %120 = vector.load %arg10[%c0_74, %c0_75] : memref<2x32xf32, #tpu.memory_space<vmem>>, vector<2x32xf32>
      %121 = vector.broadcast %119 : vector<2x1xf32> to vector<2x32xf32>
      %122 = arith.divf %120, %121 : vector<2x32xf32>
      %c0_76 = arith.constant 0 : index
      %c0_77 = arith.constant 0 : index
      %c0_78 = arith.constant 0 : index
      %123 = vector.load %arg9[%c0_76, %c0_77, %c0_78] : memref<3x2x32xf32, #tpu.memory_space<vmem>>, vector<1x2x32xf32>
      %124 = vector.shape_cast %123 : vector<1x2x32xf32> to vector<2x32xf32>
      %125 = vector.shape_cast %122 : vector<2x32xf32> to vector<1x2x32xf32>
      tpu.vector_store %arg9[%c0_76, %c0_77, %c0_78], %125 {strides = array<i32>} : memref<3x2x32xf32, #tpu.memory_space<vmem>>, vector<1x2x32xf32>,
      %c0_79 = arith.constant 0 : index
      %c0_80 = arith.constant 0 : index
      %126 = vector.load %arg11[%c0_79, %c0_80] : memref<2x32xf32, #tpu.memory_space<vmem>>, vector<2x32xf32>
      %c1_81 = arith.constant 1 : index
      %c0_82 = arith.constant 0 : index
      %c0_83 = arith.constant 0 : index
      %127 = vector.load %arg9[%c1_81, %c0_82, %c0_83] : memref<3x2x32xf32, #tpu.memory_space<vmem>>, vector<1x2x32xf32>
      %128 = vector.shape_cast %127 : vector<1x2x32xf32> to vector<2x32xf32>
      %129 = vector.shape_cast %126 : vector<2x32xf32> to vector<1x2x32xf32>
      tpu.vector_store %arg9[%c1_81, %c0_82, %c0_83], %129 {strides = array<i32>} : memref<3x2x32xf32, #tpu.memory_space<vmem>>, vector<1x2x32xf32>,
      %c0_84 = arith.constant 0 : index
      %c0_85 = arith.constant 0 : index
      %130 = vector.load %arg12[%c0_84, %c0_85] : memref<2x32xf32, #tpu.memory_space<vmem>>, vector<2x32xf32>
      %c2 = arith.constant 2 : index
      %c0_86 = arith.constant 0 : index
      %c0_87 = arith.constant 0 : index
      %131 = vector.load %arg9[%c2, %c0_86, %c0_87] : memref<3x2x32xf32, #tpu.memory_space<vmem>>, vector<1x2x32xf32>
      %132 = vector.shape_cast %131 : vector<1x2x32xf32> to vector<2x32xf32>
      %133 = vector.shape_cast %130 : vector<2x32xf32> to vector<1x2x32xf32>
      tpu.vector_store %arg9[%c2, %c0_86, %c0_87], %133 {strides = array<i32>} : memref<3x2x32xf32, #tpu.memory_space<vmem>>, vector<1x2x32xf32>,
    } else {
    }
    return
  }
  func.func @transform_0(%arg0: i32) -> (i32, i32) {
    %c0_i32 = arith.constant 0 : i32
    %c0_i32_0 = arith.constant 0 : i32
    return %arg0, %c0_i32 : i32, i32
  }
  func.func @transform_1(%arg0: i32) -> (i32, i32) {
    %c0_i32 = arith.constant 0 : i32
    %c0_i32_0 = arith.constant 0 : i32
    return %arg0, %c0_i32 : i32, i32
  }
  func.func @transform_2(%arg0: i32) -> (i32, i32) {
    %c0_i32 = arith.constant 0 : i32
    %c0_i32_0 = arith.constant 0 : i32
    %c0_i32_1 = arith.constant 0 : i32
    return %c0_i32, %c0_i32_0 : i32, i32
  }
  func.func @transform_3(%arg0: i32) -> (i32, i32) {
    %c0_i32 = arith.constant 0 : i32
    %c0_i32_0 = arith.constant 0 : i32
    %c0_i32_1 = arith.constant 0 : i32
    return %c0_i32, %c0_i32_0 : i32, i32
  }
  func.func @transform_4(%arg0: i32) -> (i32, i32) {
    %c0_i32 = arith.constant 0 : i32
    %c0_i32_0 = arith.constant 0 : i32
    %c0_i32_1 = arith.constant 0 : i32
    return %c0_i32, %c0_i32_0 : i32, i32
  }
  func.func @transform_5(%arg0: i32) -> (i32, i32) {
    %c0_i32 = arith.constant 0 : i32
    %c0_i32_0 = arith.constant 0 : i32
    %c0_i32_1 = arith.constant 0 : i32
    return %c0_i32, %c0_i32_0 : i32, i32
  }
  func.func @transform_6(%arg0: i32) -> (i32, i32) {
    %c0_i32 = arith.constant 0 : i32
    %c0_i32_0 = arith.constant 0 : i32
    %c0_i32_1 = arith.constant 0 : i32
    return %c0_i32, %c0_i32_0 : i32, i32
  }
  func.func @transform_7(%arg0: i32) -> (i32, i32) {
    %c0_i32 = arith.constant 0 : i32
    %c0_i32_0 = arith.constant 0 : i32
    %c0_i32_1 = arith.constant 0 : i32
    return %c0_i32, %c0_i32_0 : i32, i32
  }
  func.func @transform_8(%arg0: i32) -> (i32, i32, i32) {
    %c0_i32 = arith.constant 0 : i32
    %c0_i32_0 = arith.constant 0 : i32
    %c0_i32_1 = arith.constant 0 : i32
    %c0_i32_2 = arith.constant 0 : i32
    return %c0_i32, %c0_i32_0, %c0_i32_1 : i32, i32, i32
  }
}

</mosaic_0001>

<bundles_post_ra>
// kernel: tpu_custom_call.1
= control target key start
LH: loop header
LB: loop body
LE: loop exit
PB: predicated region body
PF: predicated region fallthrough
CT: control target
= control target key end

     0   :  { %vm63_vm0 = vcmask 64512   ;;  %s1629_s0 = inlined_call_operand.vmem [shape: s32[64,1], index: 0, kind: input, shape index: {}]   ;;  %s1630_s1 = inlined_call_operand.vmem [shape: bf16[64,8], index: 1, kind: input, shape index: {}]   ;;  %s1631_s2 = inlined_call_operand.vmem [shape: f32[8,32], index: 2, kind: input, shape index: {}]   ;;  %s1632_s3 = inlined_call_operand.vmem [shape: f32[1,32], index: 3, kind: input, shape index: {}]   ;;  %s1633_s4 = inlined_call_operand.vmem [shape: f32[1,32], index: 4, kind: input, shape index: {}]   ;;  %s1634_s5 = inlined_call_operand.vmem [shape: f32[1,32], index: 5, kind: input, shape index: {}]   ;;  %s1635_s6 = inlined_call_operand.vmem [shape: f32[32,32], index: 6, kind: input, shape index: {}]   ;;  %s1636_s7 = inlined_call_operand.vmem [shape: f32[1,32], index: 7, kind: input, shape index: {}]   ;;  %s1637_s8 = inlined_call_operand.hbm [shape: f32[3,2,32], index: 8, kind: output, shape index: {}]  }
   0x1   :  { %v56_v0 = vld [vmem:[%s1631_s2] sm:$0xff]  ;;  %v880_v2 = vld [vmem:[%s1630_s1 + $0x10] sm:$0xff]  }
   0x2   :  { %v864_v1 = vld [vmem:[%s1630_s1] sm:$0xff]   ;;  %103 = vmatpush.msra.mxu0 %v56_v0  ;;  %882 = vmatpush.msra.mxu3 %v56_v0  ;;  %v874_v4 = vunpack.c.h.bf16 %v880_v2 }
   0x3   :  { %v865_v3 = vunpack.c.l.bf16 %v864_v1 }
   0x4   :  { %836 = vmatmul.msk.f32.vlgmr.msra.gmra.mxu3 %vm63_vm0, %v874_v4 }
   0x5   :  { %831 = vmatmul.msk.f32.vlgmr.msra.gmra.mxu0 %vm63_vm0, %v865_v3 }
   0x6   :  { %13 = vsyncpa [#allocation7], 0  ;;  %v881_v5 = vld [vmem:[%s1630_s1 + $0x18] sm:$0xff]   ;;  %v866_v6 = vunpack.c.h.bf16 %v864_v1  ;;  %v879_v8 = vld [vmem:[%s1630_s1 + $0x8] sm:$0xff]   ;;  %v873_v12 = vunpack.c.l.bf16 %v880_v2  ;;  %vm129_vm1 = vcmask 261120   ;;  %v948_v38 = vmov 32.0  }
   0x7   :  { %v877_v7 = vunpack.c.l.bf16 %v881_v5  ;;  %v869_v9 = vunpack.c.l.bf16 %v879_v8  ;;  %v878_v10 = vunpack.c.h.bf16 %v881_v5  ;;  %v870_v11 = vunpack.c.h.bf16 %v879_v8  ;;  %v898_v13 = vld [vmem:[%s1632_s3] ss:$0 sm:$0xff]  ;;  %s819_s18 = sshll.u32 %s1637_s8, 4  ;;  %s954_s19 = smov 32   ;;  %s820_s18 = int_to_ptr.hbm [resolvable:$true] %s819_s18 }
   0x8   :  { %902 = vrcp.f32 %v948_v38  ;;  %vm449_vm7 = vcmask 7168   ;;  %s955_s20 = smov 2  }
   0xc   :  { %837 = vmatmul.msk.f32.gmra.mxu3 %vm63_vm0, %v877_v7 }
   0xd   :  { %832 = vmatmul.msk.f32.gmra.mxu0 %vm63_vm0, %v866_v6 }
   0xe   :  { %v903_v39 = vpop.eup %902 }
   0xf   :  { %v155_v40 = vmul.f32 32.0, %v903_v39  ;;  %vm159_vm2 = vweird.f32 %v903_v39 }
  0x11   :  { %v156_v41 = vsub.f32 1.0, %v155_v40  ;;  %v1132_v40 = vld [vmem:[%s1629_s0 + $0x10] sm:$0xff] }
  0x12   :  { %vm605_vm8 = vcmp.eq.s32.totalorder %v1132_v40, 1  ;;  %vm426_vm11 = vcmp.eq.s32.totalorder %v1132_v40, 0 }
  0x13   :  { %v157_v42 = vmul.f32 %v903_v39, %v156_v41 }
  0x14   :  { %838 = vmatmul.msk.f32.gmra.mxu3 %vm63_vm0, %v878_v10 }
  0x15   :  { %833 = vmatmul.msk.f32.gmra.mxu0 %vm63_vm0, %v869_v9  ;;  %v158_v43 = vadd.f32 %v903_v39, %v157_v42 }
  0x17   :  { %v1035_v44 = vsel %vm159_vm2, %v903_v39, %v158_v43 }
  0x1d   :  { %834 = vmatmul.msk.f32.gmra.mxu0 %vm63_vm0, %v870_v11 }
  0x25   :  { %835 = vmatmul.msk.f32.gmra.mxu0 %vm63_vm0, %v873_v12 }
  0x82   :  { %v105_v14 = vpop.f32.mrf.mxu0 }
  0x83   :  { %v106_v15 = vadd.f32 %v898_v13, %v105_v14 }
  0x85   :  { %v130_v16 = vsel %vm129_vm1, %v106_v15, 0.0 }
  0x86   :  { %131 = vadd.xlane.f32.xlu0 %v130_v16 }
  0x87   :  { %v120_v17 = vpop.f32.mrf.mxu3 }
  0x88   :  { %v121_v21 = vadd.f32 %v898_v13, %v120_v17 }
  0x8a   :  { %v108_v18 = vpop.f32.mrf.mxu0  ;;  %v145_v25 = vsel %vm129_vm1, %v121_v21, 0.0 }
  0x8b   :  { %v109_v19 = vadd.f32 %v898_v13, %v108_v18 }
  0x8d   :  { %v133_v20 = vsel %vm129_vm1, %v109_v19, 0.0 }
  0x8e   :  { %134 = vadd.xlane.f32.xlu1 %v133_v20 }
  0x8f   :  { %v123_v22 = vpop.f32.mrf.mxu3 }
  0x90   :  { %v124_v27 = vadd.f32 %v898_v13, %v123_v22  ;;  %v346_v22 = vld [vmem:[%s1635_s6 + $0x18] sm:$0xff] }
  0x91   :  { %387 = vmatpush.msra.mxu1 %v346_v22  ;;  %883 = vmatpush.msra.mxu2 %v346_v22  ;;  %v1202_v22 = vld [vmem:[%s1629_s0 + $0x38] sm:$0xff] }
  0x92   :  { %v111_v23 = vpop.f32.mrf.mxu0  ;;  %v148_v31 = vsel %vm129_vm1, %v124_v27, 0.0 }
  0x93   :  { %v112_v24 = vadd.f32 %v898_v13, %v111_v23  ;;  %v949_v23 = vmov 0  }
  0x94   :  { %895 = vset.pattern.permute.xlu1 %v949_v23  ;;  %896 = vset.pattern.permute.xlu2 %v949_v23 }
  0x95   :  { %v136_v26 = vsel %vm129_vm1, %v112_v24, 0.0  ;;  %897 = vset.pattern.permute.xlu0 %v949_v23 }
  0x96   :  { %137 = vadd.xlane.f32.xlu2 %v136_v26  ;;  %146 = vadd.xlane.f32.xlu1 %v145_v25  ;;  %v345_v25 = vld [vmem:[%s1635_s6 + $0x10] sm:$0xff]  ;;  %v417_v26 = vld [vmem:[%s1629_s0 + $0x8] sm:$0xff] }
  0x97   :  { %v126_v28 = vpop.f32.mrf.mxu3  ;;  %388 = vmatpush.msra.mxu1 %v345_v25  ;;  %vm425_vm4 = vcmp.eq.s32.totalorder %v417_v26, 0  ;;  %884 = vmatpush.msra.mxu2 %v345_v25  ;;  %vm604_vm9 = vcmp.eq.s32.totalorder %v417_v26, 1 }
  0x98   :  { %v127_v29 = vadd.f32 %v898_v13, %v126_v28  ;;  %v434_v28 = vsel %vm425_vm4, 1, %v949_v23 }
  0x9a   :  { %v114_v30 = vpop.f32.mrf.mxu0  ;;  %v151_v32 = vsel %vm129_vm1, %v127_v29, 0.0 }
  0x9b   :  { %v115_v36 = vadd.f32 %v898_v13, %v114_v30 }
  0x9d   :  { %v139_v37 = vsel %vm129_vm1, %v115_v36, 0.0 }
  0x9e   :  { %149 = vadd.xlane.f32.xlu2 %v148_v31  ;;  %152 = vadd.xlane.f32.xlu1 %v151_v32 }
  0xa2   :  { %v117_v33 = vpop.f32.mrf.mxu0 }
  0xa3   :  { %v118_v34 = vadd.f32 %v898_v13, %v117_v33  ;;  %v1115_v33 = vld [vmem:[%s1629_s0 + $0x18] sm:$0xff] }
  0xa4   :  { %vm427_vm6 = vcmp.eq.s32.totalorder %v1115_v33, 0  ;;  %vm606_vm10 = vcmp.eq.s32.totalorder %v1115_v33, 1 }
  0xa5   :  { %v142_v35 = vsel %vm129_vm1, %v118_v34, 0.0 }
  0xa6   :  { %143 = vadd.xlane.f32.xlu0 %v142_v35  ;;  %v436_v35 = vsel %vm427_vm6, 1, %v949_v23 }
  0xae   :  { %140 = vadd.xlane.f32.xlu0 %v139_v37 }
  0xf9   :  { %v132_v45 = vpop.xlane.xlu0 %131 }
  0xfa   :  { %v161_v46 = vmul.f32 %v1035_v44, %v132_v45 }
  0xfc   :  { %v1038_v47 = vsub.f32 %v106_v15, %v161_v46 }
  0xfe   :  { %v177_v48 = vmul.f32 %v1038_v47, %v1038_v47 }
 0x100   :  { %v185_v49 = vsel %vm129_vm1, %v177_v48, 0.0 }
 0x101   :  { %v135_v50 = vpop.xlane.xlu1 %134  ;;  %186 = vadd.xlane.f32.xlu2 %v185_v49 }
 0x102   :  { %v162_v51 = vmul.f32 %v1035_v44, %v135_v50 }
 0x104   :  { %v1044_v52 = vsub.f32 %v109_v19, %v162_v51 }
 0x106   :  { %v178_v53 = vmul.f32 %v1044_v52, %v1044_v52 }
 0x108   :  { %v188_v54 = vsel %vm129_vm1, %v178_v53, 0.0 }
 0x109   :  { %v138_v55 = vpop.xlane.xlu2 %137  ;;  %189 = vadd.xlane.f32.xlu1 %v188_v54  ;;  %v147_v56 = vpop.xlane.xlu1 %146  ;;  %v614_v54 = vsel %vm605_vm8, 1, %v949_v23 }
 0x10a   :  { %v166_v57 = vmul.f32 %v1035_v44, %v147_v56  ;;  %v163_v4 = vmul.f32 %v1035_v44, %v138_v55  ;;  %v1153_v56 = vld [vmem:[%s1629_s0 + $0x20] sm:$0xff] }
 0x10b   :  { %vm428_vm12 = vcmp.eq.s32.totalorder %v1153_v56, 0  ;;  %vm607_vm15 = vcmp.eq.s32.totalorder %v1153_v56, 1 }
 0x10c   :  { %v1050_v58 = vsub.f32 %v121_v21, %v166_v57  ;;  %v1067_v7 = vsub.f32 %v112_v24, %v163_v4  ;;  %v416_v21 = vld [vmem:[%s1629_s0] sm:$0xff]  ;;  %v437_v25 = vsel %vm428_vm12, 1, %v949_v23 }
 0x10d   :  { %vm424_vm3 = vcmp.eq.s32.totalorder %v416_v21, 0  ;;  %vm603_vm5 = vcmp.eq.s32.totalorder %v416_v21, 1 }
 0x10e   :  { %v182_v59 = vmul.f32 %v1050_v58, %v1050_v58  ;;  %v179_v14 = vmul.f32 %v1067_v7, %v1067_v7  ;;  %v433_v24 = vsel %vm424_vm3, 1, %v949_v23  ;;  %v612_v31 = vsel %vm603_vm5, 1, %v949_v23 }
 0x110   :  { %v200_v60 = vsel %vm129_vm1, %v182_v59, 0.0  ;;  %v191_v17 = vsel %vm129_vm1, %v179_v14, 0.0 }
 0x111   :  { %v150_v61 = vpop.xlane.xlu2 %149  ;;  %201 = vadd.xlane.f32.xlu2 %v200_v60  ;;  %v153_v9 = vpop.xlane.xlu1 %152 }
 0x112   :  { %v167_v62 = vmul.f32 %v1035_v44, %v150_v61  ;;  %v168_v12 = vmul.f32 %v1035_v44, %v153_v9  ;;  %v1183_v9 = vld [vmem:[%s1629_s0 + $0x30] sm:$0xff] }
 0x113   :  { %vm609_vm2 = vcmp.eq.s32.totalorder %v1183_v9, 1 }
 0x114   :  { %v1056_v63 = vsub.f32 %v124_v27, %v167_v62  ;;  %v1078_v16 = vsub.f32 %v127_v29, %v168_v12  ;;  %v344_v27 = vld [vmem:[%s1635_s6 + $0x8] sm:$0xff]  ;;  %v343_v29 = vld [vmem:[%s1635_s6] sm:$0xff] }
 0x115   :  { %389 = vmatpush.msra.mxu1 %v344_v27  ;;  %885 = vmatpush.msra.mxu2 %v344_v27 }
 0x116   :  { %v183_v0 = vmul.f32 %v1056_v63, %v1056_v63  ;;  %v184_v19 = vmul.f32 %v1078_v16, %v1078_v16 }
 0x117   :  { %390 = vmatpush.msra.mxu1 %v343_v29  ;;  %886 = vmatpush.msra.mxu2 %v343_v29 }
 0x118   :  { %v203_v1 = vsel %vm129_vm1, %v183_v0, 0.0  ;;  %v206_v20 = vsel %vm129_vm1, %v184_v19, 0.0 }
 0x119   :  { %204 = vadd.xlane.f32.xlu1 %v203_v1  ;;  %v144_v2 = vpop.xlane.xlu0 %143  ;;  %v1165_v1 = vld [vmem:[%s1629_s0 + $0x28] sm:$0xff] }
 0x11a   :  { %v165_v3 = vmul.f32 %v1035_v44, %v144_v2  ;;  %vm608_vm14 = vcmp.eq.s32.totalorder %v1165_v1, 1  ;;  %vm429_vm0 = vcmp.eq.s32.totalorder %v1165_v1, 0 }
 0x11c   :  { %v1063_v5 = vsub.f32 %v118_v34, %v165_v3 }
 0x11e   :  { %v181_v6 = vmul.f32 %v1063_v5, %v1063_v5 }
 0x120   :  { %v197_v8 = vsel %vm129_vm1, %v181_v6, 0.0  ;;  %v613_v6 = vsel %vm604_vm9, 1, %v949_v23 }
 0x121   :  { %198 = vadd.xlane.f32.xlu0 %v197_v8  ;;  %v141_v10 = vpop.xlane.xlu0 %140 }
 0x122   :  { %v164_v11 = vmul.f32 %v1035_v44, %v141_v10 }
 0x124   :  { %v1072_v13 = vsub.f32 %v115_v36, %v164_v11  ;;  %v950_v36 = vmov 0.0  }
 0x125   :  { %v847_v37 = vsel %vm424_vm3, 1.0, %v950_v36  ;;  %v848_v38 = vsel %vm425_vm4, 1.0, %v950_v36  ;;  %v855_v39 = vsel %vm603_vm5, 1.0, %v950_v36  ;;  %v857_v45 = vsel %vm605_vm8, 1.0, %v950_v36 }
 0x126   :  { %v180_v15 = vmul.f32 %v1072_v13, %v1072_v13  ;;  %v628_v41 = vsel %vm449_vm7, %v855_v39, 0.0  ;;  %v450_v42 = vsel %vm449_vm7, %v847_v37, 0.0  ;;  %v451_v43 = vsel %vm449_vm7, %v848_v38, 0.0 }
 0x127   :  { %v856_v46 = vsel %vm604_vm9, 1.0, %v950_v36  ;;  %v631_v49 = vsel %vm449_vm7, %v857_v45, 0.0  ;;  %v850_v53 = vsel %vm427_vm6, 1.0, %v950_v36  ;;  %v452_v57 = vadd.f32 %v451_v43, %v450_v42  ;;  %v1229_v45 = vld [vmem:[%s1633_s4] ss:$0 sm:$0xff] }
 0x128   :  { %v194_v18 = vsel %vm129_vm1, %v180_v15, 0.0  ;;  %v629_v50 = vsel %vm449_vm7, %v856_v46, 0.0  ;;  %v858_v59 = vsel %vm606_vm10, 1.0, %v950_v36  ;;  %v849_v2 = vsel %vm426_vm11, 1.0, %v950_v36 }
 0x129   :  { %192 = vadd.xlane.f32.xlu0 %v191_v17  ;;  %195 = vadd.xlane.f32.xlu2 %v194_v18  ;;  %v630_v55 = vadd.f32 %v629_v50, %v628_v41  ;;  %v633_v0 = vsel %vm449_vm7, %v858_v59, 0.0  ;;  %v455_v4 = vsel %vm449_vm7, %v850_v53, 0.0  ;;  %v851_v8 = vsel %vm428_vm12, 1.0, %v950_v36 }
 0x12a   :  { %v453_v12 = vsel %vm449_vm7, %v849_v2, 0.0  ;;  %v860_v14 = vsel %vm608_vm14, 1.0, %v950_v36  ;;  %v852_v17 = vsel %vm429_vm0, 1.0, %v950_v36  ;;  %v859_v21 = vsel %vm607_vm15, 1.0, %v950_v36 }
 0x12b   :  { %v632_v62 = vadd.f32 %v631_v49, %v630_v55  ;;  %v454_v15 = vadd.f32 %v453_v12, %v452_v57  ;;  %v861_v27 = vsel %vm609_vm2, 1.0, %v950_v36  ;;  %v637_v29 = vsel %vm449_vm7, %v860_v14, 0.0 }
 0x12c   :  { %vm610_vm4 = vcmp.eq.s32.totalorder %v1202_v22, 1  ;;  %v615_v42 = vsel %vm606_vm10, 1, %v949_v23  ;;  %v639_v43 = vsel %vm449_vm7, %v861_v27, 0.0  ;;  %vm431_vm6 = vcmp.eq.s32.totalorder %v1202_v22, 0 }
 0x12d   :  { %v634_v11 = vadd.f32 %v633_v0, %v632_v62  ;;  %v456_v26 = vadd.f32 %v455_v4, %v454_v15  ;;  %v862_v50 = vsel %vm610_vm4, 1.0, %v950_v36  ;;  %vm430_vm8 = vcmp.eq.s32.totalorder %v1183_v9, 0 }
 0x12e   :  { %vm36_vm9 = vcmask 1024   ;;  %v854_v59 = vsel %vm431_vm6, 1.0, %v950_v36  ;;  %v617_v0 = vsel %vm608_vm14, 1, %v949_v23  ;;  %v435_v2 = vsel %vm426_vm11, 1, %v949_v23 }
 0x12f   :  { %37 = vst.msk [vmem:[#allocation5] sm:$0x3] %vm36_vm9, %v950_v36  ;;  %v438_v15 = vsel %vm429_vm0, 1, %v949_v23 }
 0x131   :  { %207 = vadd.xlane.f32.xlu0 %v206_v20  ;;  %v457_v20 = vsel %vm449_vm7, %v851_v8, 0.0 }
 0x132   :  { %476 = vperm.xlu1 %895, %v433_v24   ;;  %v458_v37 = vadd.f32 %v457_v20, %v456_v26 }
 0x136   :  { %v432_v9 = vld [vmem:[#allocation5] sm:$0x1] }
 0x13a   :  { %653 = vperm.xlu1 %895, %v612_v31   ;;  %v635_v31 = vsel %vm449_vm7, %v859_v21, 0.0 }
 0x13b   :  { %v636_v38 = vadd.f32 %v635_v31, %v634_v11  ;;  %v463_v11 = vsel %vm449_vm7, %v854_v59, 0.0 }
 0x13d   :  { %v638_v46 = vadd.f32 %v637_v29, %v636_v38 }
 0x13f   :  { %v640_v53 = vadd.f32 %v639_v43, %v638_v46 }
 0x141   :  { %479 = vperm.xlu2 %896, %v434_v28  }
 0x142   :  { %659 = vperm.xlu1 %895, %v614_v54   ;;  %v641_v54 = vsel %vm449_vm7, %v862_v50, 0.0 }
 0x143   :  { %v642_v4 = vadd.f32 %v641_v54, %v640_v53 }
 0x145   :  { %482 = vperm.xlu0 %897, %v435_v2  }
 0x149   :  { %485 = vperm.xlu2 %896, %v436_v35  }
 0x14a   :  { %488 = vperm.xlu1 %895, %v437_v25  }
 0x151   :  { %656 = vperm.xlu2 %896, %v613_v6  }
 0x152   :  { %668 = vperm.xlu1 %895, %v617_v0  }
 0x159   :  { %662 = vperm.xlu2 %896, %v615_v42  }
 0x161   :  { %491 = vperm.xlu2 %896, %v438_v15   ;;  %v619_v15 = vsel %vm610_vm4, 1, %v949_v23 }
 0x174   :  { %v187_v30 = vpop.xlane.xlu2 %186 }
 0x175   :  { %v209_v32 = vmul.f32 %v187_v30, %v1035_v44  ;;  %v459_v30 = vsel %vm449_vm7, %v852_v17, 0.0 }
 0x176   :  { %v460_v49 = vadd.f32 %v459_v30, %v458_v37  ;;  %v440_v37 = vsel %vm431_vm6, 1, %v949_v23 }
 0x177   :  { %v1118_v34 = vadd.f32 1e-05, %v209_v32  ;;  %497 = vperm.xlu2 %896, %v440_v37  }
 0x179   :  { %904 = vrsqrt.f32 %v1118_v34  ;;  %vm231_vm13 = vweird.f32 %v1118_v34 }
 0x17c   :  { %v190_v48 = vpop.xlane.xlu1 %189 }
 0x17d   :  { %v210_v51 = vmul.f32 %v190_v48, %v1035_v44 }
 0x17f   :  { %v905_v60 = vpop.eup %904  ;;  %v1159_v61 = vadd.f32 1e-05, %v210_v51  ;;  %v1239_v51 = vld [vmem:[%s1634_s5] ss:$0 sm:$0xff] }
 0x180   :  { %v226_v3 = vmul.f32 %v905_v60, %v1118_v34  ;;  %vm232_vm3 = vweird.f32 %v905_v60 }
 0x181   :  { %906 = vrsqrt.f32 %v1159_v61  ;;  %vm233_vm5 = vmor %vm231_vm13, %vm232_vm3  ;;  %vm241_vm12 = vweird.f32 %v1159_v61 }
 0x182   :  { %v227_v10 = vmul.f32 %v905_v60, %v226_v3 }
 0x184   :  { %v228_v18 = vmul.f32 0.5, %v227_v10  ;;  %v202_v19 = vpop.xlane.xlu2 %201 }
 0x185   :  { %v214_v24 = vmul.f32 %v202_v19, %v1035_v44 }
 0x186   :  { %v229_v28 = vsub.f32 1.5, %v228_v18  ;;  %v643_v18 = vrot.slane %v642_v4, 4 }
 0x187   :  { %v907_v32 = vpop.eup %906  ;;  %v1214_v35 = vadd.f32 1e-05, %v214_v24 }
 0x188   :  { %v230_v39 = vmul.f32 %v905_v60, %v229_v28  ;;  %v236_v41 = vmul.f32 %v907_v32, %v1159_v61  ;;  %vm242_vm10 = vweird.f32 %v907_v32  ;;  %v644_v24 = vadd.f32 %v643_v18, %v642_v4 }
 0x189   :  { %908 = vrsqrt.f32 %v1214_v35  ;;  %vm243_vm11 = vmor %vm241_vm12, %vm242_vm10  ;;  %v618_v28 = vsel %vm609_vm2, 1, %v949_v23 }
 0x18a   :  { %v234_v48 = vsel %vm233_vm5, %v905_v60, %v230_v39  ;;  %v237_v33 = vmul.f32 %v907_v32, %v236_v41  ;;  %671 = vperm.xlu1 %895, %v618_v28   ;;  %v645_v29 = vrot.slane %v644_v24, 2 }
 0x18b   :  { %v305_v34 = vmul.f32 %v234_v48, %v1038_v47  ;;  %v853_v47 = vsel %vm430_vm8, 1.0, %v950_v36 }
 0x18c   :  { %v238_v55 = vmul.f32 0.5, %v237_v33  ;;  %v205_v57 = vpop.xlane.xlu1 %204  ;;  %v461_v6 = vsel %vm449_vm7, %v853_v47, 0.0  ;;  %v646_v41 = vadd.f32 %v645_v29, %v644_v24  ;;  %v611_v33 = vld [vmem:[#allocation5 + $0x1] sm:$0x1]  ;;  %vm472_vm7 = vcmask 0  }
 0x18d   :  { %v215_v60 = vmul.f32 %v205_v57, %v1035_v44  ;;  %v316_v62 = vmul.f32 %v1229_v45, %v305_v34  ;;  %v462_v12 = vadd.f32 %v461_v6, %v460_v49  ;;  %v439_v49 = vsel %vm430_vm8, 1, %v949_v23 }
 0x18e   :  { %v239_v3 = vsub.f32 1.5, %v238_v55  ;;  %v647_v43 = vrot.slane %v646_v41, 1 }
 0x18f   :  { %v1259_v8 = vpop.eup %908  ;;  %v327_v10 = vadd.f32 %v1239_v51, %v316_v62  ;;  %v1264_v40 = vadd.f32 1e-05, %v215_v60  ;;  %v464_v20 = vadd.f32 %v463_v11, %v462_v12 }
 0x190   :  { %v240_v14 = vmul.f32 %v907_v32, %v239_v3  ;;  %v276_v61 = vmul.f32 %v1259_v8, %v1214_v35  ;;  %v648_v55 = vadd.f32 %v647_v43, %v646_v41  ;;  %vm282_vm13 = vweird.f32 %v1259_v8 }
 0x191   :  { %v335_v17 = vmax.f32 %v327_v10, 0.0  ;;  %910 = vrsqrt.f32 %v1264_v40  ;;  %v465_v26 = vrot.slane %v464_v20, 4  ;;  %vm291_vm6 = vweird.f32 %v1264_v40 }
 0x192   :  { %v244_v19 = vsel %vm243_vm11, %v907_v32, %v240_v14  ;;  %v277_v38 = vmul.f32 %v1259_v8, %v276_v61  ;;  %v649_v0 = vadd.f32 %v648_v55, %v611_v33 }
 0x193   :  { %839 = vmatmul.msk.f32.vlgmr.msra.gmra.mxu1 %vm129_vm1, %v335_v17  ;;  %v306_v21 = vmul.f32 %v244_v19, %v1044_v52  ;;  %v616_v52 = vsel %vm607_vm15, 1, %v949_v23  ;;  %v466_v30 = vadd.f32 %v465_v26, %v464_v20  ;;  %vm281_vm15 = vweird.f32 %v1214_v35 }
 0x194   :  { %v199_v25 = vpop.xlane.xlu0 %198  ;;  %665 = vperm.xlu0 %897, %v616_v52   ;;  %v278_v34 = vmul.f32 0.5, %v277_v38  ;;  %650 = vst.msk [vmem:[#allocation5 + $0x1] sm:$0x1] %vm472_vm7, %v649_v0  ;;  %vm1310_vm0 = vmor %vm281_vm15, %vm282_vm13 }
 0x195   :  { %v213_v1 = vmul.f32 %v199_v25, %v1035_v44  ;;  %v317_v27 = vmul.f32 %v1229_v45, %v306_v21  ;;  %v467_v56 = vrot.slane %v466_v30, 2 }
 0x196   :  { %v279_v4 = vsub.f32 1.5, %v278_v34 }
 0x197   :  { %v221_v31 = vadd.f32 1e-05, %v213_v1  ;;  %v328_v32 = vadd.f32 %v1239_v51, %v317_v27  ;;  %v1287_v42 = vpop.eup %910  ;;  %v468_v50 = vadd.f32 %v467_v56, %v466_v30 }
 0x198   :  { %v286_v57 = vmul.f32 %v1287_v42, %v1264_v40  ;;  %v280_v18 = vmul.f32 %v1259_v8, %v279_v4  ;;  %vm292_vm4 = vweird.f32 %v1287_v42 }
 0x199   :  { %912 = vrsqrt.f32 %v221_v31  ;;  %v336_v39 = vmax.f32 %v328_v32, 0.0  ;;  %v469_v59 = vrot.slane %v468_v50, 1  ;;  %vm271_vm2 = vweird.f32 %v221_v31  ;;  %vm1325_vm9 = vmor %vm291_vm6, %vm292_vm4 }
 0x19a   :  { %v287_v6 = vmul.f32 %v1287_v42, %v286_v57  ;;  %v284_v26 = vsel %vm1310_vm0, %v1259_v8, %v280_v18 }
 0x19b   :  { %840 = vmatmul.msk.f32.gmra.mxu1 %vm129_vm1, %v336_v39  ;;  %v470_v3 = vadd.f32 %v469_v59, %v468_v50  ;;  %v310_v38 = vmul.f32 %v284_v26, %v1050_v58 }
 0x19c   :  { %v196_v46 = vpop.xlane.xlu2 %195  ;;  %v193_v48 = vpop.xlane.xlu0 %192  ;;  %494 = vperm.xlu0 %897, %v439_v49   ;;  %v288_v19 = vmul.f32 0.5, %v287_v6 }
 0x19d   :  { %v212_v53 = vmul.f32 %v196_v46, %v1035_v44  ;;  %v211_v54 = vmul.f32 %v193_v48, %v1035_v44  ;;  %v471_v11 = vadd.f32 %v470_v3, %v432_v9  ;;  %v321_v40 = vmul.f32 %v1229_v45, %v310_v38 }
 0x19e   :  { %v289_v1 = vsub.f32 1.5, %v288_v19 }
 0x19f   :  { %v913_v47 = vpop.eup %912  ;;  %v220_v60 = vadd.f32 1e-05, %v212_v53  ;;  %v1297_v62 = vadd.f32 1e-05, %v211_v54  ;;  %473 = vst.msk [vmem:[#allocation5] sm:$0x1] %vm472_vm7, %v471_v11  ;;  %v332_v59 = vadd.f32 %v1239_v51, %v321_v40 }
 0x1a0   :  { %v266_v2 = vmul.f32 %v913_v47, %v221_v31  ;;  %vm272_vm14 = vweird.f32 %v913_v47  ;;  %v290_v39 = vmul.f32 %v1287_v42, %v289_v1 }
 0x1a1   :  { %914 = vrsqrt.f32 %v220_v60  ;;  %vm273_vm3 = vmor %vm271_vm2, %vm272_vm14  ;;  %vm261_vm10 = vweird.f32 %v220_v60  ;;  %vm251_vm11 = vweird.f32 %v1297_v62 }
 0x1a2   :  { %v267_v10 = vmul.f32 %v913_v47, %v266_v2  ;;  %916 = vrsqrt.f32 %v1297_v62  ;;  %v294_v50 = vsel %vm1325_vm9, %v1287_v42, %v290_v39  ;;  %v340_v2 = vmax.f32 %v332_v59, 0.0 }
 0x1a4   :  { %v268_v12 = vmul.f32 0.5, %v267_v10  ;;  %v208_v14 = vpop.xlane.xlu0 %207  ;;  %674 = vperm.xlu0 %897, %v619_v15   ;;  %v480_v18 = vpop.permute.xlu2 %479 }
 0x1a5   :  { %v216_v17 = vmul.f32 %v208_v14, %v1035_v44  ;;  %vm500_vm2 = vcmp.eq.s32.totalorder %v480_v18, 1 }
 0x1a6   :  { %v269_v20 = vsub.f32 1.5, %v268_v12  ;;  %v782_v29 = vld [vmem:[#allocation5] sm:$0x3] }
 0x1a7   :  { %v915_v21 = vpop.eup %914  ;;  %v224_v24 = vadd.f32 1e-05, %v216_v17  ;;  %v783_v32 = vmax.f32 %v782_v29, 1.0 }
 0x1a8   :  { %v917_v61 = vpop.eup %916  ;;  %v270_v23 = vmul.f32 %v913_v47, %v269_v20  ;;  %v256_v22 = vmul.f32 %v915_v21, %v220_v60  ;;  %vm262_vm5 = vweird.f32 %v915_v21 }
 0x1a9   :  { %v246_v44 = vmul.f32 %v917_v61, %v1297_v62  ;;  %918 = vrsqrt.f32 %v224_v24  ;;  %787 = vperm.xlu2 %896, %v783_v32   ;;  %vm252_vm8 = vweird.f32 %v917_v61  ;;  %vm1329_vm12 = vmor %vm261_vm10, %vm262_vm5  ;;  %vm301_vm14 = vweird.f32 %v224_v24 }
 0x1aa   :  { %v274_v27 = vsel %vm273_vm3, %v913_v47, %v270_v23  ;;  %v257_v35 = vmul.f32 %v915_v21, %v256_v22  ;;  %vm253_vm7 = vmor %vm251_vm11, %vm252_vm8  ;;  %v311_v47 = vmul.f32 %v294_v50, %v1056_v63 }
 0x1ab   :  { %v247_v28 = vmul.f32 %v917_v61, %v246_v44  ;;  %v309_v52 = vmul.f32 %v274_v27, %v1063_v5  ;;  %v1376_v44 = vld [vmem:[%s1636_s7] ss:$0 sm:$0xff]  ;;  %s953_s7 = smov [#allocation6]  }
 0x1ac   :  { %v258_v30 = vmul.f32 0.5, %v257_v35  ;;  %v322_v3 = vmul.f32 %v1229_v45, %v311_v47  ;;  %v1359_v19 = vpop.permute.xlu2 %485  ;;  %s817_s3 = sshll.u32 %s953_s7, 4  ;;  %s818_s3 = int_to_ptr.vmem [resolvable:$true] %s817_s3 }
 0x1ad   :  { %v248_v31 = vmul.f32 0.5, %v247_v28  ;;  %v320_v37 = vmul.f32 %v1229_v45, %v309_v52  ;;  %vm502_vm11 = vcmp.eq.s32.totalorder %v1359_v19, 1 }
 0x1ae   :  { %v259_v41 = vsub.f32 1.5, %v258_v30  ;;  %v333_v63 = vadd.f32 %v1239_v51, %v322_v3 }
 0x1af   :  { %v919_v8 = vpop.eup %918  ;;  %v249_v56 = vsub.f32 1.5, %v248_v31  ;;  %v331_v5 = vadd.f32 %v1239_v51, %v320_v37 }
 0x1b0   :  { %v260_v46 = vmul.f32 %v915_v21, %v259_v41  ;;  %v296_v48 = vmul.f32 %v919_v8, %v224_v24  ;;  %vm302_vm13 = vweird.f32 %v919_v8  ;;  %v341_v11 = vmax.f32 %v333_v63, 0.0 }
 0x1b1   :  { %v250_v33 = vmul.f32 %v917_v61, %v249_v56  ;;  %v339_v49 = vmax.f32 %v331_v5, 0.0  ;;  %vm303_vm15 = vmor %vm301_vm14, %vm302_vm13  ;;  %vm34_vm13 = vcmask 254976  }
 0x1b2   :  { %v297_v34 = vmul.f32 %v919_v8, %v296_v48  ;;  %v264_v53 = vsel %vm1329_vm12, %v915_v21, %v260_v46  ;;  %v477_v21 = vpop.permute.xlu1 %476  ;;  %35 = vst.msk [vmem:[#allocation2] sm:$0x3] %vm34_vm13, %v950_v36 }
 0x1b3   :  { %v254_v54 = vsel %vm253_vm7, %v917_v61, %v250_v33  ;;  %843 = vmatmul.msk.f32.vlgmr.msra.gmra.mxu2 %vm129_vm1, %v339_v49  ;;  %v308_v42 = vmul.f32 %v264_v53, %v1072_v13  ;;  %vm499_vm0 = vcmp.eq.s32.totalorder %v477_v21, 1 }
 0x1b4   :  { %v298_v55 = vmul.f32 0.5, %v297_v34  ;;  %v307_v57 = vmul.f32 %v254_v54, %v1067_v7  ;;  %v657_v20 = vpop.permute.xlu2 %656 }
 0x1b5   :  { %v319_v6 = vmul.f32 %v1229_v45, %v308_v42  ;;  %vm677_vm4 = vcmp.eq.s32.totalorder %v657_v20, 1 }
 0x1b6   :  { %v299_v60 = vsub.f32 1.5, %v298_v55  ;;  %v318_v62 = vmul.f32 %v1229_v45, %v307_v57 }
 0x1b7   :  { %v330_v10 = vadd.f32 %v1239_v51, %v319_v6  ;;  %v1369_v22 = vpop.permute.xlu0 %482 }
 0x1b8   :  { %v300_v0 = vmul.f32 %v919_v8, %v299_v60  ;;  %v329_v9 = vadd.f32 %v1239_v51, %v318_v62  ;;  %vm501_vm8 = vcmp.eq.s32.totalorder %v1369_v22, 1 }
 0x1b9   :  { %v338_v14 = vmax.f32 %v330_v10, 0.0 }
 0x1ba   :  { %v304_v4 = vsel %vm303_vm15, %v919_v8, %v300_v0  ;;  %v337_v7 = vmax.f32 %v329_v9, 0.0 }
 0x1bb   :  { %844 = vmatmul.msk.f32.gmra.mxu2 %vm129_vm1, %v340_v2  ;;  %v312_v13 = vmul.f32 %v304_v4, %v1078_v16 }
 0x1bc   :  { %841 = vmatmul.msk.f32.gmra.mxu1 %vm129_vm1, %v337_v7  ;;  %v1361_v16 = vpop.permute.xlu2 %662 }
 0x1bd   :  { %v323_v12 = vmul.f32 %v1229_v45, %v312_v13  ;;  %v654_v45 = vpop.permute.xlu1 %653  ;;  %vm679_vm7 = vcmp.eq.s32.totalorder %v1361_v16, 1 }
 0x1be   :  { %vm676_vm3 = vcmp.eq.s32.totalorder %v654_v45, 1 }
 0x1bf   :  { %v334_v15 = vadd.f32 %v1239_v51, %v323_v12 }
 0x1c1   :  { %v342_v17 = vmax.f32 %v334_v15, 0.0 }
 0x1c3   :  { %845 = vmatmul.msk.f32.gmra.mxu2 %vm129_vm1, %v341_v11 }
 0x1c4   :  { %842 = vmatmul.msk.f32.gmra.mxu1 %vm129_vm1, %v338_v14  ;;  %v1363_v24 = vpop.permute.xlu2 %491 }
 0x1c5   :  { %v1367_v25 = vpop.permute.xlu1 %659  ;;  %vm504_vm10 = vcmp.eq.s32.totalorder %v1363_v24, 1 }
 0x1c6   :  { %vm678_vm9 = vcmp.eq.s32.totalorder %v1367_v25, 1 }
 0x1cb   :  { %846 = vmatmul.msk.f32.gmra.mxu2 %vm129_vm1, %v342_v17 }
 0x1cd   :  { %v489_v26 = vpop.permute.xlu1 %488 }
 0x1ce   :  { %vm503_vm5 = vcmp.eq.s32.totalorder %v489_v26, 1 }
 0x1d1   :  { %v1365_v61 = vpop.permute.xlu2 %497 }
 0x1d5   :  { %v1391_v56 = vpop.permute.xlu1 %668 }
 0x1d6   :  { %vm681_vm12 = vcmp.eq.s32.totalorder %v1391_v56, 1 }
 0x203   :  { %v1371_v51 = vpop.permute.xlu2 %787 }
 0x204   :  { %920 = vrcp.f32 %v1371_v51 }
 0x206   :  { %v666_v52 = vpop.permute.xlu0 %665 }
 0x207   :  { %vm680_vm6 = vcmp.eq.s32.totalorder %v666_v52, 1 }
 0x20a   :  { %v1381_v28 = vpop.eup %920 }
 0x20b   :  { %v1389_v8 = vmul.f32 %v1381_v28, %v1371_v51 }
 0x20e   :  { %v1432_v63 = vpop.permute.xlu0 %494 }
 0x20f   :  { %vm505_vm15 = vcmp.eq.s32.totalorder %v1432_v63, 1 }
 0x210   :  { %v392_v23 = vpop.f32.mrf.mxu1 }
 0x211   :  { %v393_v27 = vadd.f32 %v1376_v44, %v392_v23 }
 0x213   :  { %v507_v29 = vsel %vm499_vm0, %v393_v27, 0.0  ;;  %v540_v30 = vsel %vm499_vm0, %v393_v27, -inf  ;;  %v572_v32 = vsel %vm499_vm0, %v393_v27, inf  ;;  %v684_v31 = vsel %vm676_vm3, %v393_v27, 0.0 }
 0x214   :  { %v716_v38 = vsel %vm676_vm3, %v393_v27, -inf  ;;  %v748_v39 = vsel %vm676_vm3, %v393_v27, inf  ;;  %v515_v43 = vsel %vm129_vm1, %v507_v29, 0.0  ;;  %v1398_v33 = vsel %vm129_vm1, %v540_v30, -inf }
 0x215   :  { %v1401_v49 = vsel %vm129_vm1, %v572_v32, inf  ;;  %v692_v40 = vsel %vm129_vm1, %v684_v31, 0.0  ;;  %v1406_v34 = vsel %vm129_vm1, %v716_v38, -inf  ;;  %v1409_v53 = vsel %vm129_vm1, %v748_v39, inf }
 0x216   :  { %vm506_vm0 = vcmp.eq.s32.totalorder %v1365_v61, 1  ;;  %vm795_vm3 = vweird.f32 %v1371_v51 }
 0x218   :  { %v395_v1 = vpop.f32.mrf.mxu1 }
 0x219   :  { %v396_v35 = vadd.f32 %v1376_v44, %v395_v1  ;;  %v1457_v1 = vpop.permute.xlu1 %671 }
 0x21a   :  { %vm682_vm14 = vcmp.eq.s32.totalorder %v1457_v1, 1 }
 0x21b   :  { %v508_v37 = vsel %vm500_vm2, %v396_v35, 0.0  ;;  %v685_v41 = vsel %vm677_vm4, %v396_v35, 0.0  ;;  %v541_v46 = vsel %vm500_vm2, %v396_v35, -inf  ;;  %v573_v48 = vsel %vm500_vm2, %v396_v35, inf }
 0x21c   :  { %v516_v50 = vsel %vm129_vm1, %v508_v37, 0.0  ;;  %v693_v54 = vsel %vm129_vm1, %v685_v41, 0.0  ;;  %v717_v55 = vsel %vm677_vm4, %v396_v35, -inf  ;;  %v1415_v59 = vsel %vm129_vm1, %v541_v46, -inf }
 0x21d   :  { %v1418_v47 = vsel %vm129_vm1, %v573_v48, inf  ;;  %v517_v42 = vadd.f32 %v516_v50, %v515_v43  ;;  %v749_v0 = vsel %vm677_vm4, %v396_v35, inf  ;;  %v694_v3 = vadd.f32 %v693_v54, %v692_v40 }
 0x21e   :  { %v1427_v4 = vsel %vm129_vm1, %v717_v55, -inf  ;;  %v1441_v14 = vsel %vm129_vm1, %v749_v0, inf  ;;  %vm796_vm4 = vweird.f32 %v1381_v28 }
 0x236   :  { %v404_v5 = vpop.f32.mrf.mxu2 }
 0x237   :  { %v405_v58 = vadd.f32 %v1376_v44, %v404_v5 }
 0x239   :  { %v398_v57 = vpop.f32.mrf.mxu1  ;;  %v544_v60 = vsel %vm503_vm5, %v405_v58, -inf  ;;  %v576_v62 = vsel %vm503_vm5, %v405_v58, inf  ;;  %v720_v9 = vsel %vm680_vm6, %v405_v58, -inf  ;;  %v752_v2 = vsel %vm680_vm6, %v405_v58, inf }
 0x23a   :  { %v511_v7 = vsel %vm503_vm5, %v405_v58, 0.0  ;;  %v399_v6 = vadd.f32 %v1376_v44, %v398_v57  ;;  %v552_v13 = vsel %vm129_vm1, %v544_v60, -inf  ;;  %v584_v10 = vsel %vm129_vm1, %v576_v62, inf  ;;  %vm1612_vm5 = vmor %vm795_vm3, %vm796_vm4 }
 0x23b   :  { %v688_v11 = vsel %vm680_vm6, %v405_v58, 0.0  ;;  %v1438_v12 = vsel %vm129_vm1, %v720_v9, -inf  ;;  %v1444_v15 = vsel %vm129_vm1, %v752_v2, inf  ;;  %v522_v21 = vsel %vm129_vm1, %v511_v7, 0.0 }
 0x23c   :  { %v509_v17 = vsel %vm501_vm8, %v399_v6, 0.0  ;;  %v542_v18 = vsel %vm501_vm8, %v399_v6, -inf  ;;  %v574_v23 = vsel %vm501_vm8, %v399_v6, inf  ;;  %v686_v26 = vsel %vm678_vm9, %v399_v6, 0.0 }
 0x23d   :  { %v518_v45 = vsel %vm129_vm1, %v509_v17, 0.0  ;;  %v553_v27 = vmax.f32 %v1398_v33, %v552_v13  ;;  %v585_v35 = vmin.f32 %v1401_v49, %v584_v10  ;;  %v699_v52 = vsel %vm129_vm1, %v688_v11, 0.0 }
 0x23e   :  { %v407_v20 = vpop.f32.mrf.mxu2  ;;  %v729_v29 = vmax.f32 %v1406_v34, %v1438_v12  ;;  %v761_v30 = vmin.f32 %v1409_v53, %v1444_v15  ;;  %v1467_v22 = vsel %vm129_vm1, %v542_v18, -inf  ;;  %v519_v37 = vadd.f32 %v518_v45, %v517_v42 }
 0x23f   :  { %v408_v32 = vadd.f32 %v1376_v44, %v407_v20  ;;  %v1471_v38 = vsel %vm129_vm1, %v574_v23, inf  ;;  %v695_v39 = vsel %vm129_vm1, %v686_v26, 0.0  ;;  %v718_v5 = vsel %vm678_vm9, %v399_v6, -inf }
 0x240   :  { %v750_v43 = vsel %vm678_vm9, %v399_v6, inf  ;;  %v696_v55 = vadd.f32 %v695_v39, %v694_v3  ;;  %v792_v12 = vsub.f32 1.0, %v1389_v8 }
 0x241   :  { %v401_v31 = vpop.f32.mrf.mxu1  ;;  %v545_v46 = vsel %vm504_vm10, %v408_v32, -inf  ;;  %v577_v48 = vsel %vm504_vm10, %v408_v32, inf  ;;  %v512_v58 = vsel %vm504_vm10, %v408_v32, 0.0  ;;  %v689_v49 = vsel %vm681_vm12, %v408_v32, 0.0 }
 0x242   :  { %v402_v41 = vadd.f32 %v1376_v44, %v401_v31  ;;  %v554_v36 = vsel %vm129_vm1, %v545_v46, -inf  ;;  %v586_v33 = vsel %vm129_vm1, %v577_v48, inf  ;;  %v721_v50 = vsel %vm681_vm12, %v408_v32, -inf }
 0x243   :  { %v555_v40 = vmax.f32 %v1415_v59, %v554_v36  ;;  %v587_v25 = vmin.f32 %v1418_v47, %v586_v33  ;;  %v753_v54 = vsel %vm681_vm12, %v408_v32, inf  ;;  %v1500_v24 = vsel %vm129_vm1, %v721_v50, -inf  ;;  %v1507_v59 = vpop.permute.xlu0 %674 }
 0x244   :  { %v1503_v57 = vsel %vm129_vm1, %v753_v54, inf  ;;  %v510_v60 = vsel %vm502_vm11, %v402_v41, 0.0  ;;  %v1510_v47 = vsel %vm129_vm1, %v718_v5, -inf  ;;  %v1513_v42 = vsel %vm129_vm1, %v750_v43, inf }
 0x245   :  { %v524_v56 = vsel %vm129_vm1, %v512_v58, 0.0  ;;  %v543_v0 = vsel %vm502_vm11, %v402_v41, -inf  ;;  %v1518_v9 = vmax.f32 %v553_v27, %v555_v40  ;;  %v701_v2 = vsel %vm129_vm1, %v689_v49, 0.0 }
 0x246   :  { %v410_v62 = vpop.f32.mrf.mxu2  ;;  %v520_v3 = vsel %vm129_vm1, %v510_v60, 0.0  ;;  %v687_v7 = vsel %vm679_vm7, %v402_v41, 0.0  ;;  %v1525_v6 = vmin.f32 %v585_v35, %v587_v25  ;;  %v731_v13 = vmax.f32 %v1427_v4, %v1500_v24 }
 0x247   :  { %v763_v10 = vmin.f32 %v1441_v14, %v1503_v57  ;;  %v521_v11 = vadd.f32 %v520_v3, %v519_v37  ;;  %vm683_vm2 = vcmp.eq.s32.totalorder %v1507_v59, 1  ;;  %v551_v17 = vsel %vm129_vm1, %v543_v0, -inf }
 0x248   :  { %v575_v18 = vsel %vm502_vm11, %v402_v41, inf  ;;  %v697_v20 = vsel %vm129_vm1, %v687_v7, 0.0  ;;  %v411_v45 = vadd.f32 %v1376_v44, %v410_v62  ;;  %v719_v27 = vsel %vm679_vm7, %v402_v41, -inf }
 0x249   :  { %v523_v23 = vadd.f32 %v522_v21, %v521_v11  ;;  %v698_v26 = vadd.f32 %v697_v20, %v696_v55  ;;  %v751_v35 = vsel %vm679_vm7, %v402_v41, inf  ;;  %v583_v16 = vsel %vm129_vm1, %v575_v18, inf }
 0x24a   :  { %v513_v32 = vsel %vm505_vm15, %v411_v45, 0.0  ;;  %v546_v31 = vsel %vm505_vm15, %v411_v45, -inf  ;;  %v578_v19 = vsel %vm505_vm15, %v411_v45, inf  ;;  %v690_v37 = vsel %vm682_vm14, %v411_v45, 0.0 }
 0x24b   :  { %v700_v21 = vadd.f32 %v699_v52, %v698_v26  ;;  %v525_v39 = vadd.f32 %v524_v56, %v523_v23  ;;  %v526_v5 = vsel %vm129_vm1, %v513_v32, 0.0  ;;  %v556_v43 = vsel %vm129_vm1, %v546_v31, -inf }
 0x24c   :  { %v588_v41 = vsel %vm129_vm1, %v578_v19, inf  ;;  %v703_v46 = vsel %vm129_vm1, %v690_v37, 0.0  ;;  %v722_v48 = vsel %vm682_vm14, %v411_v45, -inf  ;;  %v727_v58 = vsel %vm129_vm1, %v719_v27, -inf }
 0x24d   :  { %v759_v36 = vsel %vm129_vm1, %v751_v35, inf  ;;  %v557_v52 = vmax.f32 %v1467_v22, %v556_v43  ;;  %v702_v33 = vadd.f32 %v701_v2, %v700_v21  ;;  %v527_v49 = vadd.f32 %v526_v5, %v525_v39 }
 0x24e   :  { %v413_v63 = vpop.f32.mrf.mxu2  ;;  %v754_v40 = vsel %vm682_vm14, %v411_v45, inf  ;;  %v589_v50 = vmin.f32 %v1471_v38, %v588_v41  ;;  %v732_v55 = vsel %vm129_vm1, %v722_v48, -inf  ;;  %v951_v60 = vmov -inf  }
 0x24f   :  { %v414_v25 = vadd.f32 %v1376_v44, %v413_v63  ;;  %v704_v54 = vadd.f32 %v703_v46, %v702_v33  ;;  %38 = vst.msk [vmem:[#allocation3] sm:$0x3] %vm34_vm13, %v951_v60  ;;  %v764_v62 = vsel %vm129_vm1, %v754_v40, inf  ;;  %v952_v44 = vmov inf  }
 0x250   :  { %39 = vst.msk [vmem:[#allocation4] sm:$0x3] %vm34_vm13, %v952_v44  ;;  %v733_v61 = vmax.f32 %v1510_v47, %v732_v55  ;;  %v765_v19 = vmin.f32 %v1513_v42, %v764_v62  ;;  %v736_v59 = vmax.f32 %v729_v29, %v731_v13  ;;  %v768_v42 = vmin.f32 %v761_v30, %v763_v10 }
 0x251   :  { %v514_v22 = vsel %vm506_vm0, %v414_v25, 0.0  ;;  %v547_v56 = vsel %vm506_vm0, %v414_v25, -inf  ;;  %v579_v1 = vsel %vm506_vm0, %v414_v25, inf  ;;  %v691_v3 = vsel %vm683_vm2, %v414_v25, 0.0 }
 0x252   :  { %v528_v38 = vsel %vm129_vm1, %v514_v22, 0.0  ;;  %v558_v0 = vsel %vm129_vm1, %v547_v56, -inf  ;;  %v590_v2 = vsel %vm129_vm1, %v579_v1, inf  ;;  %v705_v20 = vsel %vm129_vm1, %v691_v3, 0.0 }
 0x253   :  { %v529_v7 = vadd.f32 %v528_v38, %v527_v49  ;;  %v559_v11 = vmax.f32 %v551_v17, %v558_v0  ;;  %v591_v18 = vmin.f32 %v583_v16, %v590_v2  ;;  %v706_v45 = vadd.f32 %v705_v20, %v704_v54 }
 0x254   :  { %v723_v23 = vsel %vm683_vm2, %v414_v25, -inf  ;;  %v755_v26 = vsel %vm683_vm2, %v414_v25, inf  ;;  %v793_v54 = vmul.f32 %v1381_v28, %v792_v12  ;;  %v801_v2 = vand.u32 2147483648, %v1371_v51 }
 0x255   :  { %v530_v27 = vrot.slane %v529_v7, 4  ;;  %v561_v35 = vmax.f32 %v557_v52, %v559_v11  ;;  %v593_v32 = vmin.f32 %v589_v50, %v591_v18  ;;  %v734_v31 = vsel %vm129_vm1, %v723_v23, -inf  ;;  %v474_v52 = vld [vmem:[#allocation2] sm:$0x1]  ;;  %v651_v50 = vld [vmem:[#allocation2 + $0x1] sm:$0x1] }
 0x256   :  { %v707_v17 = vrot.slane %v706_v45, 4  ;;  %v735_v37 = vmax.f32 %v727_v58, %v734_v31  ;;  %v766_v21 = vsel %vm129_vm1, %v755_v26, inf  ;;  %vm537_vm1 = vcmask 253952   ;;  %v539_v44 = vld [vmem:[#allocation3] sm:$0x1] }
 0x257   :  { %v531_v39 = vadd.f32 %v530_v27, %v529_v7  ;;  %v562_v47 = vmax.f32 %v1518_v9, %v561_v35  ;;  %v594_v5 = vmin.f32 %v1525_v6, %v593_v32  ;;  %v767_v43 = vmin.f32 %v759_v36, %v766_v21  ;;  %v571_v38 = vld [vmem:[#allocation4] sm:$0x1]  ;;  %v715_v35 = vld [vmem:[#allocation3 + $0x1] sm:$0x1]  ;;  %v747_v31 = vld [vmem:[#allocation4 + $0x1] sm:$0x1] }
 0x258   :  { %v708_v16 = vadd.f32 %v707_v17, %v706_v45  ;;  %v737_v41 = vmax.f32 %v733_v61, %v735_v37  ;;  %v794_v18 = vadd.f32 %v1381_v28, %v793_v54  ;;  %v799_v20 = vand.u32 2147483647, %v1371_v51 }
 0x259   :  { %v532_v9 = vrot.slane %v531_v39, 2  ;;  %v563_v46 = vrot.slane %v562_v47, 4  ;;  %v595_v6 = vrot.slane %v594_v5, 4  ;;  %v769_v48 = vmin.f32 %v765_v19, %v767_v43 }
 0x25a   :  { %v709_v63 = vrot.slane %v708_v16, 2  ;;  %v738_v58 = vmax.f32 %v736_v59, %v737_v41  ;;  %v802_v19 = vor.u32 1.1754944e-38, %v801_v2  ;;  %v798_v37 = vsel %vm1612_vm5, %v1381_v28, %v794_v18 }
 0x25b   :  { %v533_v4 = vadd.f32 %v532_v9, %v531_v39  ;;  %v564_v24 = vmax.f32 %v562_v47, %v563_v46  ;;  %v596_v36 = vmin.f32 %v594_v5, %v595_v6  ;;  %v770_v34 = vmin.f32 %v768_v42, %v769_v48 }
 0x25c   :  { %v710_v29 = vadd.f32 %v709_v63, %v708_v16  ;;  %v739_v14 = vrot.slane %v738_v58, 4  ;;  %vm800_vm6 = vcmp.eq.f32.partialorder %v799_v20, 8.507059e+37 }
 0x25d   :  { %v534_v57 = vrot.slane %v533_v4, 1  ;;  %v565_v13 = vrot.slane %v564_v24, 2  ;;  %v597_v53 = vrot.slane %v596_v36, 2  ;;  %v771_v15 = vrot.slane %v770_v34, 4 }
 0x25e   :  { %v711_v30 = vrot.slane %v710_v29, 1  ;;  %v740_v10 = vmax.f32 %v738_v58, %v739_v14  ;;  %v803_v39 = vsel %vm800_vm6, %v802_v19, %v798_v37 }
 0x25f   :  { %v535_v33 = vadd.f32 %v534_v57, %v533_v4  ;;  %v566_v49 = vmax.f32 %v564_v24, %v565_v13  ;;  %v598_v40 = vmin.f32 %v596_v36, %v597_v53  ;;  %v772_v25 = vmin.f32 %v770_v34, %v771_v15 }
 0x260   :  { %v712_v55 = vadd.f32 %v711_v30, %v710_v29  ;;  %v741_v60 = vrot.slane %v740_v10, 2 }
 0x261   :  { %v567_v8 = vrot.slane %v566_v49, 1  ;;  %v599_v62 = vrot.slane %v598_v40, 1  ;;  %v773_v22 = vrot.slane %v772_v25, 2  ;;  %v536_v56 = vadd.f32 %v535_v33, %v474_v52 }
 0x262   :  { %v742_v1 = vmax.f32 %v740_v10, %v741_v60  ;;  %v713_v0 = vadd.f32 %v712_v55, %v651_v50 }
 0x263   :  { %v568_v3 = vmax.f32 %v566_v49, %v567_v8  ;;  %v600_v7 = vmin.f32 %v598_v40, %v599_v62  ;;  %v774_v11 = vmin.f32 %v772_v25, %v773_v22  ;;  %538 = vst.msk [vmem:[#allocation2] sm:$0x1] %vm537_vm1, %v536_v56 }
 0x264   :  { %v743_v61 = vrot.slane %v742_v1, 1  ;;  %714 = vst.msk [vmem:[#allocation2 + $0x1] sm:$0x1] %vm537_vm1, %v713_v0 }
 0x265   :  { %v775_v23 = vrot.slane %v774_v11, 1  ;;  %v569_v26 = vmax.f32 %v539_v44, %v568_v3  ;;  %v601_v27 = vmin.f32 %v571_v38, %v600_v7 }
 0x266   :  { %v744_v32 = vmax.f32 %v742_v1, %v743_v61 }
 0x267   :  { %v776_v17 = vmin.f32 %v774_v11, %v775_v23  ;;  %570 = vst.msk [vmem:[#allocation3] sm:$0x1] %vm537_vm1, %v569_v26 }
 0x268   :  { %602 = vst.msk [vmem:[#allocation4] sm:$0x1] %vm537_vm1, %v601_v27  ;;  %v745_v51 = vmax.f32 %v715_v35, %v744_v32 }
 0x269   :  { %v777_v21 = vmin.f32 %v747_v31, %v776_v17 }
 0x26a   :  { %746 = vst.msk [vmem:[#allocation3 + $0x1] sm:$0x1] %vm537_vm1, %v745_v51 }
 0x26b   :  { %778 = vst.msk [vmem:[#allocation4 + $0x1] sm:$0x1] %vm537_vm1, %v777_v21  ;;  %v784_v47 = vld [vmem:[#allocation2] sm:$0x3] }
 0x26c   :  { %v804_v5 = vmul.f32 %v803_v39, %v784_v47 }
 0x26e   :  { %806 = vst.msk [vmem:[#allocation6] sm:$0x3] %vm34_vm13, %v804_v5 }
 0x271   :  { %v807_v28 = vld [vmem:[#allocation3] sm:$0x3] }
 0x272   :  { %809 = vst.msk [vmem:[#allocation6 + $0x2] sm:$0x3] %vm34_vm13, %v807_v28  ;;  %v810_v43 = vld [vmem:[#allocation4] sm:$0x3] }
 0x273   :  { %812 = vst.msk [vmem:[#allocation6 + $0x4] sm:$0x3] %vm34_vm13, %v810_v43 }
 0x274   :  { %825 = dma.vmem_to_hbm [thread:$0]  %s818_s3, 96, %s820_s18, [#allocation7], %s954_s19, %s954_s19, %s955_s20  }
 0x275   :  { %946 = dma.done.wait [#allocation7], 96  }
 0x276   :  { %947 = vsyncadd [#allocation7], 4294967200 }
 0x277   :  { %830 = vsyncpa [#allocation7], 1 }

</bundles_post_ra>
